<compile_context>
chip_gen: v7x
topology: tpu7x:2x2x1
jax: 0.10.0
libtpu: 0.0.40
codegen_flags: <defaults>
</compile_context>

<pallas_src>
import numpy as np
import jax
import jax.numpy as jnp
from jax.experimental import pallas as pl
from jax.experimental.pallas import tpu as pltpu

K = 11                      # kernel size
PAD_T = 5                   # ConvTranspose2d padding
PAD_EQ = K - 1 - PAD_T      # equivalent correlation padding (= 5)


def convt_kernel(lhs_ref, b_ref, o_ref):
    """Single fused MXU contraction.

    lhs_ref : VMEM (N*H_out, Cin*K*W)  im2col of the H-padded input
    b_ref   : VMEM (Cin*K*W, COL)      banded (Toeplitz-in-W) conv weights
    o_ref   : VMEM (N*H_out, COL)      lane-dense output slab
    """
    o_ref[...] = jnp.dot(lhs_ref[...], b_ref[...],
                         preferred_element_type=jnp.float32)


def _im2col_h(x_pad_h, h_out):
    """(N, Cin, Hp, W) -> (N*H_out, Cin*K*W), inner index order (ci, kh, q)."""
    n, cin, _, w = x_pad_h.shape
    wins = jnp.stack([x_pad_h[:, :, kh:kh + h_out, :] for kh in range(K)],
                     axis=2)                                  # (N, Cin, K, H_out, W)
    wins = jnp.transpose(wins, (0, 3, 1, 2, 4))               # (N, H_out, Cin, K, W)
    return wins.reshape(n * h_out, cin * K * w)


def _banded_weights(w_t, w, w_out, col):
    """(Cin, Cout, K, K) ConvTranspose weight -> (Cin*K*W, COL) banded matrix.

    B[(ci*K+kh)*W + q, co*W_out + b] = w_conv[co, ci, kh, q + PAD_EQ - b]
    for 0 <= q + PAD_EQ - b < K, else 0 (W-direction padding absorbed here),
    where w_conv is the transposed + 180deg-flipped (correlation-form) kernel.
    """
    cin, cout = w_t.shape[0], w_t.shape[1]
    w_conv = jnp.flip(jnp.transpose(w_t, (1, 0, 2, 3)), axis=(2, 3))   # (Cout,Cin,K,K)

    q_idx = jnp.arange(w)[:, None]                    # (W, 1)
    b_idx = jnp.arange(w_out)[None, :]                # (1, W_out)
    kw = q_idx + PAD_EQ - b_idx                       # (W, W_out)
    valid = ((kw >= 0) & (kw < K)).astype(jnp.float32)
    band = w_conv[:, :, :, jnp.clip(kw, 0, K - 1)] * valid             # (Cout,Cin,K,W,W_out)
    band = jnp.transpose(band, (1, 2, 3, 0, 4)).reshape(cin * K * w, cout * w_out)
    return jnp.zeros((cin * K * w, col), jnp.float32).at[:, :cout * w_out].set(band)


@jax.jit
def conv_transpose2d_pallas(x, w_t):
    """x: (N, Cin, H, W) f32; w_t: ConvTranspose weight (Cin, Cout, K, K) f32."""
    n, cin, h, w = x.shape
    cout = w_t.shape[1]
    h_out = h - 1 + K - 2 * PAD_T                      # = H for these params
    w_out = w - 1 + K - 2 * PAD_T
    col = max(128, ((cout * w_out + 127) // 128) * 128)   # lane-dense output width
    ckw = cin * K * w                                  # fused contraction depth
    rows = n * h_out                                   # batch folded into MXU M dim

    # H-only padding; W padding is folded into the banded weights.
    x_pad = jnp.pad(x.astype(jnp.float32),
                    ((0, 0), (0, 0), (PAD_EQ, PAD_EQ), (0, 0)))
    lhs = _im2col_h(x_pad, h_out)                      # layout plumbing (no FLOPs)
    b = _banded_weights(w_t.astype(jnp.float32), w, w_out, col)

    out_flat = pl.pallas_call(
        convt_kernel,
        out_shape=jax.ShapeDtypeStruct((rows, col), jnp.float32),
        grid=(1,),                                     # whole problem in one grid step
        in_specs=[
            pl.BlockSpec((rows, ckw), lambda i: (0, 0)),
            pl.BlockSpec((ckw, col), lambda i: (0, 0)),
        ],
        out_specs=pl.BlockSpec((rows, col), lambda i: (0, 0)),
        compiler_params=pltpu.CompilerParams(
            dimension_semantics=("arbitrary",),
            vmem_limit_bytes=32 * 1024 * 1024),
    )(lhs, b)

    # Layout plumbing back to NCHW (wrapper-side reshape/transpose only).
    out = out_flat[:, :cout * w_out]
    return out.reshape(n, h_out, cout, w_out).transpose(0, 2, 1, 3)


def reference_conv_transpose(x, w_t):
    """Pure numpy scatter-form reference of ConvTranspose2d(stride=1, padding=PAD_T)."""
    x = np.asarray(x, np.float64)
    w = np.asarray(w_t, np.float64)  # (Cin, Cout, K, K)
    n, cin, h, wd = x.shape
    full = np.zeros((n, w.shape[1], h + K - 1, wd + K - 1), np.float64)
    for kh in range(K):
        for kw in range(K):
            full[:, :, kh:kh + h, kw:kw + wd] += np.einsum(
                'ncij,cd->ndij', x, w[:, :, kh, kw])
    return full[:, :, PAD_T:PAD_T + (h - 1 + K - 2 * PAD_T),
                PAD_T:PAD_T + (wd - 1 + K - 2 * PAD_T)]


if __name__ == "__main__":
    key = jax.random.PRNGKey(0)
    kx, kw = jax.random.split(key)

    # Module requires in_channels=1 for conv_t; 12x12 spatial per the spec.
    N, Cin, H, W = 2, 1, 12, 12
    Cout = 3
    x = jax.random.normal(kx, (N, Cin, H, W), dtype=jnp.float32)

    # Deterministic weight init (PyTorch-style uniform bound), shape (Cin, Cout, K, K).
    bound = 1.0 / np.sqrt(Cout * K * K)
    w_t = jax.random.uniform(kw, (Cin, Cout, K, K), dtype=jnp.float32,
                             minval=-bound, maxval=bound)

    out = jax.block_until_ready(conv_transpose2d_pallas(x, w_t))

    ref = reference_conv_transpose(x, w_t)
    assert out.shape == ref.shape, (out.shape, ref.shape)
    np.testing.assert_allclose(np.asarray(out), ref, atol=1e-4, rtol=1e-4)

    print("KERNEL_OK")
</pallas_src>

<mosaic_0001>
module attributes {stable_mosaic.version = 11 : i64} {
  func.func @convt_kernel(%arg0: i32, %arg1: memref<24x132xf32, #tpu.memory_space<vmem>>, %arg2: memref<132x128xf32, #tpu.memory_space<vmem>>, %arg3: memref<24x128xf32, #tpu.memory_space<vmem>>) attributes {dimension_semantics = [#tpu.dimension_semantics<arbitrary>], iteration_bounds = array<i64: 1>, scalar_prefetch = 0 : i64, scratch_operands = 0 : i64, tpu.core_type = #tpu.core_type<tc>, window_params = [{pipeline_mode = #tpu.pipeline_mode<synchronous>, transform_indices = @transform_0, window_bounds = array<i64: 24, 132>}, {pipeline_mode = #tpu.pipeline_mode<synchronous>, transform_indices = @transform_1, window_bounds = array<i64: 132, 128>}, {pipeline_mode = #tpu.pipeline_mode<synchronous>, transform_indices = @transform_2, window_bounds = array<i64: 24, 128>}]} {
    %c0 = arith.constant 0 : index
    %c0_0 = arith.constant 0 : index
    %0 = vector.load %arg1[%c0, %c0_0] : memref<24x132xf32, #tpu.memory_space<vmem>>, vector<24x132xf32>
    %c0_1 = arith.constant 0 : index
    %c0_2 = arith.constant 0 : index
    %1 = vector.load %arg2[%c0_1, %c0_2] : memref<132x128xf32, #tpu.memory_space<vmem>>, vector<132x128xf32>
    %cst = arith.constant dense<0.000000e+00> : vector<24x128xf32>
    %2 = tpu.matmul %0, %1, %cst {dimension_numbers = #tpu.dot_dimension_numbers<[1], [0], [0], [1], [0, 0, 1, 1], [], []>} : vector<24x132xf32>, vector<132x128xf32>, vector<24x128xf32> -> vector<24x128xf32>
    %c0_3 = arith.constant 0 : index
    %c0_4 = arith.constant 0 : index
    %3 = vector.load %arg3[%c0_3, %c0_4] : memref<24x128xf32, #tpu.memory_space<vmem>>, vector<24x128xf32>
    tpu.vector_store %arg3[%c0_3, %c0_4], %2 {strides = array<i32>} : memref<24x128xf32, #tpu.memory_space<vmem>>, vector<24x128xf32>,
    return
  }
  func.func @transform_0(%arg0: i32) -> (i32, i32) {
    %c0_i32 = arith.constant 0 : i32
    %c0_i32_0 = arith.constant 0 : i32
    %c0_i32_1 = arith.constant 0 : i32
    return %c0_i32, %c0_i32_0 : i32, i32
  }
  func.func @transform_1(%arg0: i32) -> (i32, i32) {
    %c0_i32 = arith.constant 0 : i32
    %c0_i32_0 = arith.constant 0 : i32
    %c0_i32_1 = arith.constant 0 : i32
    return %c0_i32, %c0_i32_0 : i32, i32
  }
  func.func @transform_2(%arg0: i32) -> (i32, i32) {
    %c0_i32 = arith.constant 0 : i32
    %c0_i32_0 = arith.constant 0 : i32
    %c0_i32_1 = arith.constant 0 : i32
    return %c0_i32, %c0_i32_0 : i32, i32
  }
}

</mosaic_0001>

<bundles_post_ra>
// kernel: conv_transpose2d_pallas.1
= control target key start
LH: loop header
LB: loop body
LE: loop exit
PB: predicated region body
PF: predicated region fallthrough
CT: control target
= control target key end

     0   :  { %v183_v0 = vmov 0.0|0.0   ;;  %vm34_vm0 = vcmask 31744   ;;  %v184_v27 = vmov 0.0   ;;  %vm44_vm1 = vcmask 1043456   ;;  %s281_s1 = inlined_call_operand.vmem [shape: f32[132,128], index: 1, kind: input, shape index: {}]   ;;  %s282_s0 = inlined_call_operand.vmem [shape: f32[24,132], index: 0, kind: input, shape index: {}]   ;;  %s283_s2 = inlined_call_operand.vmem [shape: f32[24,128], index: 2, kind: output, shape index: {}]  }
   0x1   :  { %163 = vmatprep.subr.bf16.mxu1 %v183_v0  ;;  %v17_v1 = vld [vmem:[%s281_s1] sm:$0xff]  ;;  %v18_v2 = vld [vmem:[%s281_s1 + $0x8] sm:$0xff]  ;;  %139 = vmatprep.subr.bf16.mxu0 %v183_v0  ;;  %v19_v3 = vld [vmem:[%s281_s1 + $0x10] sm:$0xff] }
   0x2   :  { %v140_v4 = vpack.c.bf16 %v18_v2, %v17_v1  ;;  %v20_v5 = vld [vmem:[%s281_s1 + $0x18] sm:$0xff]  ;;  %v21_v7 = vld [vmem:[%s281_s1 + $0x20] sm:$0xff]  ;;  %v22_v8 = vld [vmem:[%s281_s1 + $0x28] sm:$0xff] }
   0x3   :  { %v143_v6 = vpack.c.bf16 %v20_v5, %v19_v3  ;;  %v14_v9 = vld [vmem:[%s282_s0 + $0x18] sm:$0xff]  ;;  %v12_v10 = vld [vmem:[%s282_s0 + $0x8] sm:$0xff]  ;;  %v146_v11 = vpack.c.bf16 %v22_v8, %v21_v7  ;;  %v23_v12 = vld [vmem:[%s281_s1 + $0x30] sm:$0xff] }
   0x4   :  { %172 = vmatpush1.bf16.msra.mxu1 %v140_v4  ;;  %141 = vmatpush1.bf16.msra.mxu0 %v140_v4  ;;  %v24_v13 = vld [vmem:[%s281_s1 + $0x38] sm:$0xff]  ;;  %v25_v15 = vld [vmem:[%s281_s1 + $0x40] sm:$0xff]  ;;  %v26_v16 = vld [vmem:[%s281_s1 + $0x48] sm:$0xff] }
   0x5   :  { %164 = vmatprep.subr.bf16.mxu1 %v183_v0  ;;  %142 = vmatprep.subr.bf16.mxu0 %v183_v0  ;;  %v149_v14 = vpack.c.bf16 %v24_v13, %v23_v12  ;;  %v152_v17 = vpack.c.bf16 %v26_v16, %v25_v15  ;;  %v27_v18 = vld [vmem:[%s281_s1 + $0x50] sm:$0xff]  ;;  %v28_v19 = vld [vmem:[%s281_s1 + $0x58] sm:$0xff]  ;;  %v29_v21 = vld [vmem:[%s281_s1 + $0x60] sm:$0xff] }
   0x6   :  { %137 = vmatprep.mubr.msk.f32.mxu1 %vm34_vm0, %v14_v9  ;;  %136 = vmatprep.mubr.msk.f32.mxu0 %vm34_vm0, %v12_v10  ;;  %v155_v20 = vpack.c.bf16 %v28_v19, %v27_v18  ;;  %v30_v22 = vld [vmem:[%s281_s1 + $0x68] sm:$0xff]  ;;  %v31_v24 = vld [vmem:[%s281_s1 + $0x70] sm:$0xff]  ;;  %v32_v25 = vld [vmem:[%s281_s1 + $0x78] sm:$0xff] }
   0x7   :  { %v158_v23 = vpack.c.bf16 %v30_v22, %v29_v21  ;;  %v161_v26 = vpack.c.bf16 %v32_v25, %v31_v24  ;;  %v33_v28 = vld [vmem:[%s281_s1 + $0x80] sm:$0xf]  ;;  %v13_v29 = vld [vmem:[%s282_s0 + $0x10] sm:$0xff]  ;;  %v16_v31 = vld [vmem:[%s282_s0 + $0x28] sm:$0xff] }
   0x8   :  { %173 = vmatpush1.bf16.msra.mxu1 %v143_v6  ;;  %144 = vmatpush1.bf16.msra.mxu0 %v143_v6  ;;  %v11_v30 = vld [vmem:[%s282_s0] sm:$0xff] }
   0x9   :  { %165 = vmatprep.subr.bf16.mxu1 %v183_v0  ;;  %145 = vmatprep.subr.bf16.mxu0 %v183_v0  ;;  %v15_v32 = vld [vmem:[%s282_s0 + $0x20] sm:$0xff] }
   0xc   :  { %174 = vmatpush1.bf16.msra.mxu1 %v146_v11  ;;  %147 = vmatpush1.bf16.msra.mxu0 %v146_v11 }
   0xd   :  { %166 = vmatprep.subr.bf16.mxu1 %v183_v0  ;;  %148 = vmatprep.subr.bf16.mxu0 %v183_v0 }
  0x10   :  { %175 = vmatpush1.bf16.msra.mxu1 %v149_v14  ;;  %150 = vmatpush1.bf16.msra.mxu0 %v149_v14 }
  0x11   :  { %167 = vmatprep.subr.bf16.mxu1 %v183_v0  ;;  %151 = vmatprep.subr.bf16.mxu0 %v183_v0 }
  0x14   :  { %176 = vmatpush1.bf16.msra.mxu1 %v152_v17  ;;  %153 = vmatpush1.bf16.msra.mxu0 %v152_v17 }
  0x15   :  { %168 = vmatprep.subr.bf16.mxu1 %v183_v0  ;;  %154 = vmatprep.subr.bf16.mxu0 %v183_v0 }
  0x18   :  { %177 = vmatpush1.bf16.msra.mxu1 %v155_v20  ;;  %156 = vmatpush1.bf16.msra.mxu0 %v155_v20 }
  0x19   :  { %169 = vmatprep.subr.bf16.mxu1 %v183_v0  ;;  %157 = vmatprep.subr.bf16.mxu0 %v183_v0 }
  0x1c   :  { %178 = vmatpush1.bf16.msra.mxu1 %v158_v23  ;;  %159 = vmatpush1.bf16.msra.mxu0 %v158_v23 }
  0x1d   :  { %170 = vmatprep.subr.bf16.mxu1 %v183_v0  ;;  %160 = vmatprep.subr.bf16.mxu0 %v183_v0 }
  0x20   :  { %179 = vmatpush1.bf16.msra.mxu1 %v161_v26  ;;  %162 = vmatpush1.bf16.msra.mxu0 %v161_v26 }
  0x21   :  { %171 = vmatprep.subr.mxu1 %v184_v27  ;;  %80 = vmatprep.subr.mxu0 %v184_v27 }
  0x24   :  { %180 = vmatpush1.msk.msra.mxu1 %vm44_vm1, %v33_v28  ;;  %135 = vmatpush1.msk.msra.mxu0 %vm44_vm1, %v33_v28 }
  0x25   :  { %118 = vmatmul.mubr.f32.vlgmr.msra.gmra.mrb[0].mxu1 %v13_v29  ;;  %113 = vmatmul.mubr.f32.vlgmr.msra.gmra.mrb[0].mxu0 %v11_v30 }
  0x26   :  { %138 = vmatprep.mubr.msk.f32.mxu1 %vm34_vm0, %v16_v31 }
  0x29   :  { %123 = vmatmul.mubr.f32.gmra.mrb[2].mxu1 %v15_v32 }
  0xf8   :  { %v119_v33 = vpop.f32.mrb[0].mxu1  ;;  %v114_v34 = vpop.f32.mrb[0].mxu0 }
  0xf9   :  { %129 = vst [vmem:[%s283_s2 + $0x8] sm:$0xff] %v119_v33  ;;  %v121_v35 = vpop.f32.mrb[1].mxu1  ;;  %128 = vst [vmem:[%s283_s2] sm:$0xff] %v114_v34  ;;  %v116_v36 = vpop.f32.mrb[1].mxu0 }
  0xfc   :  { %v124_v37 = vpop.f32.mrb[2].mxu1 }
  0xfd   :  { %130 = vst [vmem:[%s283_s2 + $0x10] sm:$0xff] %v124_v37  ;;  %v126_v38 = vpop.f32.mrb[3].mxu1 }

</bundles_post_ra>
